<compile_context>
chip_gen: v7x
topology: tpu7x:2x2x1
jax: 0.10.0
libtpu: 0.0.40
codegen_flags: <defaults>
</compile_context>

<pallas_src>
import math

import jax
import jax.numpy as jnp
from jax.experimental import pallas as pl
from jax.experimental.pallas import tpu as pltpu


def actor_fc_kernel(x_ref, w1_ref, b1_ref, w2_ref, b2_ref, w3_ref, b3_ref,
                    out_ref):
    """Fused feature-major forward pass on one batch tile.

    x_ref:  [S,  tm]   (batch on the lane axis)
    wN_ref: [outN, inN] (PyTorch layout, used directly as W @ X)
    bN_ref: [outN, 1]  (f32, lane-broadcast)
    out:    [A,  tm]
    """
    x = x_ref[...]
    if x.dtype != w1_ref.dtype:                       # consistent MXU dtypes
        x = x.astype(w1_ref.dtype)

    h1 = jnp.dot(w1_ref[...], x, preferred_element_type=jnp.float32)
    h1 = jnp.maximum(h1 + b1_ref[...], 0.0)           # f32 epilogue

    h2 = jnp.dot(w2_ref[...], h1.astype(w2_ref.dtype),
                 preferred_element_type=jnp.float32)
    h2 = jnp.maximum(h2 + b2_ref[...], 0.0)           # f32 epilogue

    h3 = jnp.dot(w3_ref[...], h2.astype(w3_ref.dtype),
                 preferred_element_type=jnp.float32)
    out_ref[...] = jnp.tanh(h3 + b3_ref[...]).astype(out_ref.dtype)


def prepare_actor_fc_params(params, dot_dtype=jnp.float32):
    """One-time layout/dtype conversion (hoisted out of the per-call path).

    Feature-major: keep PyTorch [out, in] weights as-is (kernel does W @ X);
    biases become [out, 1] and stay f32 so the epilogue runs in f32 even when
    dot_dtype=bf16 (v6e/v7x MXU fast path; v5e keeps f32 VPU/EUP epilogue).
    """
    return {
        "w1": jnp.asarray(params["w1"], dot_dtype),          # [fc1, state]
        "b1": jnp.asarray(params["b1"][:, None], jnp.float32),
        "w2": jnp.asarray(params["w2"], dot_dtype),          # [fc2, fc1]
        "b2": jnp.asarray(params["b2"][:, None], jnp.float32),
        "w3": jnp.asarray(params["w3"], dot_dtype),          # [action, fc2]
        "b3": jnp.asarray(params["b3"][:, None], jnp.float32),
    }


def _pick_batch_tile(B, block_b):
    """Batch tile for the lane axis: multiple of 128 (or full extent),
    aiming for >=2 grid steps so v7x can use both TensorCores."""
    if B < 2 * 128:
        return B                         # single step; block == full extent
    tm = min(block_b, -(-B // 2))        # ceil(B/2): at least 2 grid steps
    return max(128, (tm // 128) * 128)   # lane-axis tiles: multiple of 128


def actor_fc_forward(state, prep, *, block_b=2048):
    """state: [B, state_size] -> [B, action_size].

    Internally runs feature-major ([features, batch]) so lanes carry the
    batch; the [B,S]->[S,B] / [A,B]->[B,A] transposes are wrapper-side
    layout plumbing.
    """
    w1, b1 = prep["w1"], prep["b1"]
    w2, b2 = prep["w2"], prep["b2"]
    w3, b3 = prep["w3"], prep["b3"]

    B, S = state.shape
    F1, F2, A = w1.shape[0], w2.shape[0], w3.shape[0]

    # Feature-major activation slab; cast in the wrapper if dots are bf16 so
    # activation HBM traffic halves and the in-kernel cast is a no-op.
    x_t = state.T                                     # [S, B]
    if x_t.dtype != w1.dtype:
        x_t = x_t.astype(w1.dtype)

    tm = _pick_batch_tile(B, block_b)
    grid = (pl.cdiv(B, tm),)

    def resident(arr):
        # Constant block index across the batch grid -> stays in VMEM.
        return pl.BlockSpec(arr.shape, lambda i, _n=arr.ndim: (0,) * _n)

    itemsize = jnp.dtype(state.dtype).itemsize
    flops = 2 * B * (S * F1 + F1 * F2 + F2 * A)
    bytes_accessed = (
        B * S * jnp.dtype(x_t.dtype).itemsize
        + sum(int(a.size) * jnp.dtype(a.dtype).itemsize
              for a in (w1, b1, w2, b2, w3, b3))
        + B * A * itemsize)

    out_t = pl.pallas_call(
        actor_fc_kernel,
        out_shape=jax.ShapeDtypeStruct((A, B), state.dtype),  # [A, B]
        grid=grid,
        in_specs=[
            pl.BlockSpec((S, tm), lambda i: (0, i)),   # activations: lane=batch
            resident(w1), resident(b1),
            resident(w2), resident(b2),
            resident(w3), resident(b3),
        ],
        out_specs=pl.BlockSpec((A, tm), lambda i: (0, i)),     # lane-dense store
        compiler_params=pltpu.CompilerParams(
            dimension_semantics=("parallel",)),
        cost_estimate=pl.CostEstimate(
            flops=flops,
            transcendentals=B * A,                     # tanh
            bytes_accessed=bytes_accessed),
    )(x_t, w1, b1, w2, b2, w3, b3)

    return out_t.T                                     # [B, A]


def init_actor_fc_params(key, state_size, action_size, fc1_units, fc2_units):
    """Deterministic init mirroring ActorFC.reset_parameters semantics.

    hidden_init uses layer.weight.size()[0] == out_features (PyTorch quirk),
    so lim = 1/sqrt(out_features) for fc1/fc2 weights. Biases keep the
    nn.Linear default uniform(-1/sqrt(in_features), 1/sqrt(in_features)).
    """
    ks = jax.random.split(key, 6)

    def uni(k, shape, lim):
        return jax.random.uniform(k, shape, jnp.float32, -lim, lim)

    lim1 = 1.0 / math.sqrt(fc1_units)
    lim2 = 1.0 / math.sqrt(fc2_units)
    return {
        # PyTorch Linear weight layout: [out_features, in_features]
        "w1": uni(ks[0], (fc1_units, state_size), lim1),
        "b1": uni(ks[1], (fc1_units,), 1.0 / math.sqrt(state_size)),
        "w2": uni(ks[2], (fc2_units, fc1_units), lim2),
        "b2": uni(ks[3], (fc2_units,), 1.0 / math.sqrt(fc1_units)),
        "w3": uni(ks[4], (action_size, fc2_units), 0.003),
        "b3": uni(ks[5], (action_size,), 1.0 / math.sqrt(fc2_units)),
    }


def actor_fc_reference(state, params):
    """Pure-JAX reference for correctness check (PyTorch layout params)."""
    h = jnp.maximum(state @ params["w1"].T + params["b1"], 0.0)
    h = jnp.maximum(h @ params["w2"].T + params["b2"], 0.0)
    return jnp.tanh(h @ params["w3"].T + params["b3"])


if __name__ == "__main__":
    state_size, action_size = 16, 4
    fc1_units, fc2_units = 64, 32

    key = jax.random.PRNGKey(0)
    k_state, k_state2, k_params = jax.random.split(key, 3)

    params = init_actor_fc_params(k_params, state_size, action_size,
                                  fc1_units, fc2_units)
    # Layout conversion done ONCE, outside the call path.
    prep_f32 = prepare_actor_fc_params(params)                    # f32 MXU
    prep_bf16 = prepare_actor_fc_params(params, jnp.bfloat16)     # bf16 MXU

    # 1) Small-batch check (single grid step, blocks == full arrays).
    B = 2
    state = jax.random.normal(k_state, (B, state_size), dtype=jnp.float32)
    out = jax.block_until_ready(actor_fc_forward(state, prep_f32))
    ref = actor_fc_reference(state, params)
    assert out.shape == (B, action_size), out.shape
    assert jnp.allclose(out, ref, atol=1e-5, rtol=1e-5)

    # 2) Larger batch exercising the lane-aligned batch grid (2 steps of 256)
    #    with VMEM-resident weights.
    B2 = 512
    state2 = jax.random.normal(k_state2, (B2, state_size), dtype=jnp.float32)
    fwd = jax.jit(lambda s, p: actor_fc_forward(s, p, block_b=256))
    out2 = jax.block_until_ready(fwd(state2, prep_f32))
    ref2 = actor_fc_reference(state2, params)
    assert out2.shape == (B2, action_size), out2.shape
    assert jnp.allclose(out2, ref2, atol=1e-5, rtol=1e-5)

    # 3) bf16-MXU / f32-epilogue path (consistent dot dtypes, loose tol).
    out3 = jax.block_until_ready(fwd(state2, prep_bf16))
    assert out3.shape == (B2, action_size), out3.shape
    assert jnp.allclose(out3, ref2, atol=5e-2, rtol=5e-2)

    print("KERNEL_OK")
</pallas_src>

<mosaic_0001>
module attributes {stable_mosaic.version = 11 : i64} {
  func.func @actor_fc_kernel(%arg0: i32, %arg1: memref<16x2xf32, #tpu.memory_space<vmem>>, %arg2: memref<64x16xf32, #tpu.memory_space<vmem>>, %arg3: memref<64x1xf32, #tpu.memory_space<vmem>>, %arg4: memref<32x64xf32, #tpu.memory_space<vmem>>, %arg5: memref<32x1xf32, #tpu.memory_space<vmem>>, %arg6: memref<4x32xf32, #tpu.memory_space<vmem>>, %arg7: memref<4x1xf32, #tpu.memory_space<vmem>>, %arg8: memref<4x2xf32, #tpu.memory_space<vmem>>) attributes {dimension_semantics = [#tpu.dimension_semantics<parallel>], iteration_bounds = array<i64: 1>, scalar_prefetch = 0 : i64, scratch_operands = 0 : i64, tpu.core_type = #tpu.core_type<tc>, window_params = [{transform_indices = @transform_0, window_bounds = array<i64: 16, 2>}, {pipeline_mode = #tpu.pipeline_mode<synchronous>, transform_indices = @transform_1, window_bounds = array<i64: 64, 16>}, {pipeline_mode = #tpu.pipeline_mode<synchronous>, transform_indices = @transform_2, window_bounds = array<i64: 64, 1>}, {pipeline_mode = #tpu.pipeline_mode<synchronous>, transform_indices = @transform_3, window_bounds = array<i64: 32, 64>}, {pipeline_mode = #tpu.pipeline_mode<synchronous>, transform_indices = @transform_4, window_bounds = array<i64: 32, 1>}, {pipeline_mode = #tpu.pipeline_mode<synchronous>, transform_indices = @transform_5, window_bounds = array<i64: 4, 32>}, {pipeline_mode = #tpu.pipeline_mode<synchronous>, transform_indices = @transform_6, window_bounds = array<i64: 4, 1>}, {transform_indices = @transform_7, window_bounds = array<i64: 4, 2>}]} {
    %c0 = arith.constant 0 : index
    %c0_0 = arith.constant 0 : index
    %0 = vector.load %arg1[%c0, %c0_0] : memref<16x2xf32, #tpu.memory_space<vmem>>, vector<16x2xf32>
    %c0_1 = arith.constant 0 : index
    %c0_2 = arith.constant 0 : index
    %1 = vector.load %arg2[%c0_1, %c0_2] : memref<64x16xf32, #tpu.memory_space<vmem>>, vector<64x16xf32>
    %cst = arith.constant dense<0.000000e+00> : vector<64x2xf32>
    %2 = tpu.matmul %1, %0, %cst {dimension_numbers = #tpu.dot_dimension_numbers<[1], [0], [0], [1], [0, 0, 1, 1], [], []>} : vector<64x16xf32>, vector<16x2xf32>, vector<64x2xf32> -> vector<64x2xf32>
    %c0_3 = arith.constant 0 : index
    %c0_4 = arith.constant 0 : index
    %3 = vector.load %arg3[%c0_3, %c0_4] : memref<64x1xf32, #tpu.memory_space<vmem>>, vector<64x1xf32>
    %4 = vector.broadcast %3 : vector<64x1xf32> to vector<64x2xf32>
    %5 = arith.addf %2, %4 : vector<64x2xf32>
    %cst_5 = arith.constant 0.000000e+00 : f32
    %6 = vector.broadcast %cst_5 : f32 to vector<64x2xf32>
    %7 = arith.maximumf %5, %6 : vector<64x2xf32>
    %c0_6 = arith.constant 0 : index
    %c0_7 = arith.constant 0 : index
    %8 = vector.load %arg4[%c0_6, %c0_7] : memref<32x64xf32, #tpu.memory_space<vmem>>, vector<32x64xf32>
    %cst_8 = arith.constant dense<0.000000e+00> : vector<32x2xf32>
    %9 = tpu.matmul %8, %7, %cst_8 {dimension_numbers = #tpu.dot_dimension_numbers<[1], [0], [0], [1], [0, 0, 1, 1], [], []>} : vector<32x64xf32>, vector<64x2xf32>, vector<32x2xf32> -> vector<32x2xf32>
    %c0_9 = arith.constant 0 : index
    %c0_10 = arith.constant 0 : index
    %10 = vector.load %arg5[%c0_9, %c0_10] : memref<32x1xf32, #tpu.memory_space<vmem>>, vector<32x1xf32>
    %11 = vector.broadcast %10 : vector<32x1xf32> to vector<32x2xf32>
    %12 = arith.addf %9, %11 : vector<32x2xf32>
    %cst_11 = arith.constant 0.000000e+00 : f32
    %13 = vector.broadcast %cst_11 : f32 to vector<32x2xf32>
    %14 = arith.maximumf %12, %13 : vector<32x2xf32>
    %c0_12 = arith.constant 0 : index
    %c0_13 = arith.constant 0 : index
    %15 = vector.load %arg6[%c0_12, %c0_13] : memref<4x32xf32, #tpu.memory_space<vmem>>, vector<4x32xf32>
    %cst_14 = arith.constant dense<0.000000e+00> : vector<4x2xf32>
    %16 = tpu.matmul %15, %14, %cst_14 {dimension_numbers = #tpu.dot_dimension_numbers<[1], [0], [0], [1], [0, 0, 1, 1], [], []>} : vector<4x32xf32>, vector<32x2xf32>, vector<4x2xf32> -> vector<4x2xf32>
    %c0_15 = arith.constant 0 : index
    %c0_16 = arith.constant 0 : index
    %17 = vector.load %arg7[%c0_15, %c0_16] : memref<4x1xf32, #tpu.memory_space<vmem>>, vector<4x1xf32>
    %18 = vector.broadcast %17 : vector<4x1xf32> to vector<4x2xf32>
    %19 = arith.addf %16, %18 : vector<4x2xf32>
    %20 = math.tanh %19 : vector<4x2xf32>
    %c0_17 = arith.constant 0 : index
    %c0_18 = arith.constant 0 : index
    %21 = vector.load %arg8[%c0_17, %c0_18] : memref<4x2xf32, #tpu.memory_space<vmem>>, vector<4x2xf32>
    tpu.vector_store %arg8[%c0_17, %c0_18], %20 {strides = array<i32>} : memref<4x2xf32, #tpu.memory_space<vmem>>, vector<4x2xf32>,
    return
  }
  func.func @transform_0(%arg0: i32) -> (i32, i32) {
    %c0_i32 = arith.constant 0 : i32
    %c0_i32_0 = arith.constant 0 : i32
    return %c0_i32, %arg0 : i32, i32
  }
  func.func @transform_1(%arg0: i32) -> (i32, i32) {
    %c0_i32 = arith.constant 0 : i32
    %c0_i32_0 = arith.constant 0 : i32
    %c0_i32_1 = arith.constant 0 : i32
    return %c0_i32, %c0_i32_0 : i32, i32
  }
  func.func @transform_2(%arg0: i32) -> (i32, i32) {
    %c0_i32 = arith.constant 0 : i32
    %c0_i32_0 = arith.constant 0 : i32
    %c0_i32_1 = arith.constant 0 : i32
    return %c0_i32, %c0_i32_0 : i32, i32
  }
  func.func @transform_3(%arg0: i32) -> (i32, i32) {
    %c0_i32 = arith.constant 0 : i32
    %c0_i32_0 = arith.constant 0 : i32
    %c0_i32_1 = arith.constant 0 : i32
    return %c0_i32, %c0_i32_0 : i32, i32
  }
  func.func @transform_4(%arg0: i32) -> (i32, i32) {
    %c0_i32 = arith.constant 0 : i32
    %c0_i32_0 = arith.constant 0 : i32
    %c0_i32_1 = arith.constant 0 : i32
    return %c0_i32, %c0_i32_0 : i32, i32
  }
  func.func @transform_5(%arg0: i32) -> (i32, i32) {
    %c0_i32 = arith.constant 0 : i32
    %c0_i32_0 = arith.constant 0 : i32
    %c0_i32_1 = arith.constant 0 : i32
    return %c0_i32, %c0_i32_0 : i32, i32
  }
  func.func @transform_6(%arg0: i32) -> (i32, i32) {
    %c0_i32 = arith.constant 0 : i32
    %c0_i32_0 = arith.constant 0 : i32
    %c0_i32_1 = arith.constant 0 : i32
    return %c0_i32, %c0_i32_0 : i32, i32
  }
  func.func @transform_7(%arg0: i32) -> (i32, i32) {
    %c0_i32 = arith.constant 0 : i32
    %c0_i32_0 = arith.constant 0 : i32
    return %c0_i32, %arg0 : i32, i32
  }
}

</mosaic_0001>

<bundles_post_ra>
// kernel: tpu_custom_call.1
= control target key start
LH: loop header
LB: loop body
LE: loop exit
PB: predicated region body
PF: predicated region fallthrough
CT: control target
= control target key end

     0   :  { %vm84_vm0 = vcmask 130048   ;;  %v563_v3 = vmov 0   ;;  %vm250_vm1 = vcmask 523264   ;;  %vm565_vm2 = vmmov 0   ;;  %s706_s0 = inlined_call_operand.vmem [shape: f32[16,2], index: 0, kind: input, shape index: {}]   ;;  %s707_s1 = inlined_call_operand.vmem [shape: f32[64,16], index: 1, kind: input, shape index: {}]   ;;  %s708_s2 = inlined_call_operand.vmem [shape: f32[64,1], index: 2, kind: input, shape index: {}]   ;;  %s709_s4 = inlined_call_operand.vmem [shape: f32[32,1], index: 4, kind: input, shape index: {}]   ;;  %s710_s6 = inlined_call_operand.vmem [shape: f32[4,1], index: 6, kind: input, shape index: {}]   ;;  %s711_s3 = inlined_call_operand.vmem [shape: f32[32,64], index: 3, kind: input, shape index: {}]   ;;  %s712_s5 = inlined_call_operand.vmem [shape: f32[4,32], index: 5, kind: input, shape index: {}]   ;;  %s713_s7 = inlined_call_operand.vmem [shape: f32[4,2], index: 7, kind: output, shape index: {}]  }
   0x1   :  { %v26_v0 = vld [vmem:[%s706_s0] sm:$0xff]  ;;  %v27_v1 = vld [vmem:[%s706_s0 + $0x8] sm:$0xff]  ;;  %559 = vset.pattern.permute.xlu0 %v563_v3  ;;  %560 = vset.pattern.permute.xlu1 %v563_v3  ;;  %v38_v7 = vld [vmem:[%s708_s2 + $0x10] sm:$0xff]  ;;  %vm359_vm3 = vcmask 261120   ;;  %vm434_vm4 = vcmask 11264  }
   0x2   :  { %v28_v2 = vld [vmem:[%s707_s1] sm:$0xff]  ;;  %v529_v4 = vpack.c.bf16 %v27_v1, %v26_v0  ;;  %v29_v6 = vld [vmem:[%s707_s1 + $0x8] sm:$0xff]  ;;  %v30_v8 = vld [vmem:[%s707_s1 + $0x10] sm:$0xff]  ;;  %56 = vperm.xlu1 %560, %v38_v7   ;;  %v564_v1 = vmov 0.0|0.0  }
   0x3   :  { %484 = vmatprep.mubr.msk.f32.mxu0 %vm84_vm0, %v28_v2  ;;  %v36_v5 = vld [vmem:[%s708_s2] sm:$0xff]  ;;  %v37_v9 = vld [vmem:[%s708_s2 + $0x8] sm:$0xff]  ;;  %v39_v10 = vld [vmem:[%s708_s2 + $0x18] sm:$0xff]  ;;  %v566_v2 = vmov 0.0  }
   0x4   :  { %530 = vmatprep.subr.bf16.mxu0 %v529_v4  ;;  %46 = vperm.xlu0 %559, %v36_v5   ;;  %v31_v11 = vld [vmem:[%s707_s1 + $0x18] sm:$0xff]  ;;  %v32_v12 = vld [vmem:[%s707_s1 + $0x20] sm:$0xff]  ;;  %v41_v14 = vld [vmem:[%s708_s2 + $0x28] sm:$0xff] }
   0x5   :  { %532 = vmatpush3.bf16.msra.mxu0 %v529_v4  ;;  %v40_v13 = vld [vmem:[%s708_s2 + $0x20] sm:$0xff]  ;;  %v33_v15 = vld [vmem:[%s707_s1 + $0x28] sm:$0xff]  ;;  %v34_v16 = vld [vmem:[%s707_s1 + $0x30] sm:$0xff] }
   0x6   :  { %61 = vperm.xlu1 %560, %v39_v10   ;;  %v42_v17 = vld [vmem:[%s708_s2 + $0x30] sm:$0xff]  ;;  %v43_v18 = vld [vmem:[%s708_s2 + $0x38] sm:$0xff]  ;;  %v226_v20 = vld [vmem:[%s709_s4] sm:$0xff]  ;;  %549 = vmatprep.subr.bf16.mxu0 %v564_v1 }
   0x7   :  { %v35_v19 = vld [vmem:[%s707_s1 + $0x38] sm:$0xff]  ;;  %v227_v21 = vld [vmem:[%s709_s4 + $0x8] sm:$0xff]  ;;  %v228_v22 = vld [vmem:[%s709_s4 + $0x10] sm:$0xff] }
   0x8   :  { %485 = vmatmul.mubr.msk.f32.vlgmr.msra.gmra.mrb[0].mxu0 %vm84_vm0, %v29_v6  ;;  %51 = vperm.xlu0 %559, %v37_v9   ;;  %v229_v23 = vld [vmem:[%s709_s4 + $0x18] sm:$0xff]  ;;  %v353_v24 = vld [vmem:[%s710_s6] sm:$0xf]  ;;  %v223_v62 = vld [vmem:[%s711_s3 + $0x8] sm:$0xff] }
   0x9   :  { %487 = vmatprep.mubr.msk.f32.mxu0 %vm84_vm0, %v30_v8  ;;  %v222_v25 = vld [vmem:[%s711_s3] sm:$0xff]  ;;  %v224_v63 = vld [vmem:[%s711_s3 + $0x10] sm:$0xff]  ;;  %v225_v0 = vld [vmem:[%s711_s3 + $0x18] sm:$0xff] }
   0xa   :  { %71 = vperm.xlu1 %560, %v41_v14   ;;  %512 = vmatprep.mubr.msk.f32.mxu1 %vm250_vm1, %v222_v25 }
   0xc   :  { %488 = vmatmul.mubr.msk.f32.gmra.mrb[2].mxu0 %vm84_vm0, %v31_v11  ;;  %66 = vperm.xlu0 %559, %v40_v13  }
   0xd   :  { %490 = vmatprep.mubr.msk.f32.mxu0 %vm84_vm0, %v32_v12 }
   0xe   :  { %81 = vperm.xlu1 %560, %v43_v18  }
  0x10   :  { %491 = vmatmul.mubr.msk.f32.gmra.mrb[4].mxu0 %vm84_vm0, %v33_v15  ;;  %76 = vperm.xlu0 %559, %v42_v17  }
  0x11   :  { %493 = vmatprep.mubr.msk.f32.mxu0 %vm84_vm0, %v34_v16 }
  0x12   :  { %237 = vperm.xlu1 %560, %v227_v21   ;;  %v352_v21 = vld [vmem:[%s712_s5] sm:$0xf] }
  0x14   :  { %494 = vmatmul.mubr.msk.f32.gmra.mrb[6].mxu0 %vm84_vm0, %v35_v19  ;;  %232 = vperm.xlu0 %559, %v226_v20  }
  0x15   :  { %526 = vmatprep.mubr.msk.f32.mxu0 %vm565_vm2, %v566_v2 }
  0x16   :  { %247 = vperm.xlu1 %560, %v229_v23  }
  0x18   :  { %242 = vperm.xlu0 %559, %v228_v22  }
  0x1c   :  { %356 = vperm.xlu0 %559, %v353_v24  }
  0x81   :  { %v57_v27 = vpop.permute.xlu1 %56 }
  0x83   :  { %v47_v26 = vpop.permute.xlu0 %46 }
  0x85   :  { %v62_v29 = vpop.permute.xlu1 %61 }
  0x87   :  { %v52_v28 = vpop.permute.xlu0 %51 }
  0x89   :  { %v72_v39 = vpop.permute.xlu1 %71 }
  0x8b   :  { %v67_v42 = vpop.permute.xlu0 %66 }
  0x8d   :  { %v82_v51 = vpop.permute.xlu1 %81 }
  0x8f   :  { %v77_v54 = vpop.permute.xlu0 %76 }
  0x91   :  { %v238_v3 = vpop.permute.xlu1 %237 }
  0x93   :  { %v233_v4 = vpop.permute.xlu0 %232 }
  0x95   :  { %v248_v10 = vpop.permute.xlu1 %247 }
  0x97   :  { %v243_v13 = vpop.permute.xlu0 %242 }
  0x9b   :  { %v357_v22 = vpop.permute.xlu0 %356 }
  0xdb   :  { %v486_v30 = vpop.f32.mrb[0].mxu0 }
  0xdc   :  { %v181_v31 = vadd.f32 %v486_v30, %v52_v28  ;;  %v175_v32 = vpop.f32.mrb[1].mxu0 }
  0xdd   :  { %v176_v33 = vadd.f32 %v175_v32, %v47_v26 }
  0xde   :  { %v215_v34 = vmax.f32 %v181_v31, 0.0 }
  0xdf   :  { %v214_v35 = vmax.f32 %v176_v33, 0.0  ;;  %v489_v36 = vpop.f32.mrb[2].mxu0 }
  0xe0   :  { %v191_v37 = vadd.f32 %v489_v36, %v62_v29  ;;  %v185_v38 = vpop.f32.mrb[3].mxu0 }
  0xe1   :  { %v186_v40 = vadd.f32 %v185_v38, %v57_v27  ;;  %v533_v41 = vpack.c.bf16 %v215_v34, %v214_v35 }
  0xe2   :  { %v217_v43 = vmax.f32 %v191_v37, 0.0 }
  0xe3   :  { %v216_v44 = vmax.f32 %v186_v40, 0.0  ;;  %v492_v45 = vpop.f32.mrb[4].mxu0  ;;  %534 = vmatprep.subr.bf16.mxu1 %v533_v41 }
  0xe4   :  { %v201_v46 = vadd.f32 %v492_v45, %v72_v39  ;;  %v195_v47 = vpop.f32.mrb[5].mxu0  ;;  %536 = vmatpush3.bf16.msra.mxu1 %v533_v41 }
  0xe5   :  { %v537_v48 = vpack.c.bf16 %v217_v43, %v216_v44  ;;  %v196_v49 = vadd.f32 %v195_v47, %v67_v42 }
  0xe6   :  { %v219_v50 = vmax.f32 %v201_v46, 0.0 }
  0xe7   :  { %v218_v52 = vmax.f32 %v196_v49, 0.0  ;;  %v495_v53 = vpop.f32.mrb[6].mxu0  ;;  %538 = vmatprep.subr.bf16.mxu1 %v537_v48 }
  0xe8   :  { %v211_v55 = vadd.f32 %v495_v53, %v82_v51  ;;  %v205_v56 = vpop.f32.mrb[7].mxu0  ;;  %540 = vmatpush3.bf16.msra.mxu1 %v537_v48 }
  0xe9   :  { %v541_v57 = vpack.c.bf16 %v219_v50, %v218_v52  ;;  %v206_v58 = vadd.f32 %v205_v56, %v77_v54 }
  0xea   :  { %v221_v59 = vmax.f32 %v211_v55, 0.0 }
  0xeb   :  { %v220_v60 = vmax.f32 %v206_v58, 0.0  ;;  %542 = vmatprep.subr.bf16.mxu1 %v541_v57 }
  0xec   :  { %544 = vmatpush3.bf16.msra.mxu1 %v541_v57 }
  0xed   :  { %v545_v61 = vpack.c.bf16 %v221_v59, %v220_v60 }
  0xef   :  { %546 = vmatprep.subr.bf16.mxu1 %v545_v61 }
  0xf0   :  { %548 = vmatpush3.bf16.msra.mxu1 %v545_v61 }
  0xf3   :  { %513 = vmatmul.mubr.msk.f32.vlgmr.msra.gmra.mrb[0].mxu1 %vm250_vm1, %v223_v62 }
  0xf4   :  { %515 = vmatprep.mubr.msk.f32.mxu1 %vm250_vm1, %v224_v63 }
  0xf7   :  { %516 = vmatmul.mubr.msk.f32.gmra.mrb[2].mxu1 %vm250_vm1, %v225_v0 }
 0x1c6   :  { %v514_v5 = vpop.f32.mrb[0].mxu1 }
 0x1c7   :  { %v335_v6 = vadd.f32 %v514_v5, %v238_v3  ;;  %v329_v7 = vpop.f32.mrb[1].mxu1 }
 0x1c8   :  { %v330_v8 = vadd.f32 %v329_v7, %v233_v4 }
 0x1c9   :  { %v349_v9 = vmax.f32 %v335_v6, 0.0 }
 0x1ca   :  { %v348_v11 = vmax.f32 %v330_v8, 0.0  ;;  %v517_v12 = vpop.f32.mrb[2].mxu1 }
 0x1cb   :  { %v345_v14 = vadd.f32 %v517_v12, %v248_v10  ;;  %v339_v15 = vpop.f32.mrb[3].mxu1 }
 0x1cc   :  { %v550_v16 = vpack.c.bf16 %v349_v9, %v348_v11  ;;  %v340_v17 = vadd.f32 %v339_v15, %v243_v13 }
 0x1cd   :  { %v351_v18 = vmax.f32 %v345_v14, 0.0 }
 0x1ce   :  { %v350_v19 = vmax.f32 %v340_v17, 0.0  ;;  %551 = vmatpush3.bf16.msra.mxu0 %v550_v16 }
 0x1cf   :  { %552 = vmatprep.subr.bf16.mxu0 %v564_v1 }
 0x1d0   :  { %v553_v20 = vpack.c.bf16 %v351_v18, %v350_v19 }
 0x1d2   :  { %554 = vmatpush3.bf16.msra.mxu0 %v553_v20 }
 0x1d5   :  { %527 = vmatmul.mubr.msk.f32.vlgmr.msra.gmra.mrb[8].mxu0 %vm359_vm3, %v352_v21 }
 0x2a8   :  { %v429_v23 = vpop.f32.mrb[8].mxu0 }
 0x2a9   :  { %v430_v24 = vadd.f32 %v429_v23, %v357_v22  ;;  %v528_v25 = vpop.f32.mrb[9].mxu0 }
 0x2ab   :  { %561 = vtanh.f32 %v430_v24 }
 0x2b5   :  { %v562_v26 = vpop.eup %561 }
 0x2b6   :  { %435 = vst.msk [vmem:[%s713_s7] sm:$0xf] %vm434_vm4, %v562_v26 }

</bundles_post_ra>
